<compile_context>
chip_gen: v5e
topology: v5e:2x2
jax: 0.10.0
libtpu: 0.0.40
codegen_flags: <defaults>
</compile_context>

<pallas_src>
import functools

import jax
import jax.numpy as jnp
from jax.experimental import pallas as pl
from jax.experimental.pallas import tpu as pltpu


def _se_kernel(x_ref, w1_ref, w2t_ref, o_ref, *, inv_hw):
    # x_ref : (Bt, C, HWp)   w1_ref : (Cr, C)   w2t_ref : (Cr, C)
    x = x_ref[...]                                            # input dtype

    # Squeeze: global average pool.  Sum over the (zero-padded) spatial axis,
    # scaled by 1 / true_HW so padding does not bias the mean.  Accumulate f32.
    m = jnp.sum(x.astype(jnp.float32), axis=-1) * inv_hw      # (Bt, C) f32

    # Excitation: fc1 -> LeakyReLU(0.01) -> fc2 -> sigmoid (all tiny, f32).
    # fc1: contract m (Bt, C) with w1 (Cr, C) over C (lane axis of both).
    h = jax.lax.dot_general(
        m, w1_ref[...], (((1,), (1,)), ((), ())),
        preferred_element_type=jnp.float32)                   # (Bt, Cr)
    h = jnp.where(h >= 0, h, 0.01 * h)                        # LeakyReLU
    # fc2: contract h (Bt, Cr) with w2t (Cr, C) over Cr.
    s = jax.lax.dot_general(
        h, w2t_ref[...], (((1,), (0,)), ((), ())),
        preferred_element_type=jnp.float32)                   # (Bt, C)
    s = jax.nn.sigmoid(s)

    # Scale: per-channel rescale in the input dtype (bf16 multiply on v6e/v7x).
    o_ref[...] = (x * s.astype(x.dtype)[:, :, None]).astype(o_ref.dtype)


def se_layer(x_nchw, w1, w2):
    """x_nchw: (B, C, H, W); w1: (C//r, C) [fc1.weight]; w2: (C, C//r) [fc2.weight]."""
    B, C, H, W = x_nchw.shape
    HW = H * W
    Cr = w1.shape[0]
    assert w1.shape == (Cr, C) and w2.shape == (C, Cr)

    # --- Lane-dense spatial axis: pad HW up to a multiple of 128. ---
    LANE = 128
    HWp = ((HW + LANE - 1) // LANE) * LANE
    x3 = x_nchw.reshape(B, C, HW)
    if HWp != HW:
        x3 = jnp.pad(x3, ((0, 0), (0, 0), (0, HWp - HW)))

    # Present both weight tiles as (Cr, C): the wide C axis lives on lanes,
    # avoiding a (C, Cr) sliver tile in VMEM.  (w2 transposed once, tiny.)
    w2t = jnp.transpose(w2)                                   # (Cr, C)

    # --- Batch tile: biggest block whose double-buffered in+out footprint
    #     (4 copies of the block) fits a budget that is safe on v5e/v6e/v7x. ---
    itemsize = jnp.dtype(x_nchw.dtype).itemsize
    block_budget = 16 * 1024 * 1024                           # bytes for blocks
    per_batch = C * HWp * itemsize
    bt = max(1, min(B, block_budget // max(1, 4 * per_batch)))
    while B % bt != 0:                                        # keep blocks exact
        bt -= 1
    grid_b = B // bt

    kernel = functools.partial(_se_kernel, inv_hw=1.0 / HW)

    out = pl.pallas_call(
        kernel,
        out_shape=jax.ShapeDtypeStruct((B, C, HWp), x_nchw.dtype),
        grid_spec=pltpu.PrefetchScalarGridSpec(
            num_scalar_prefetch=0,
            grid=(grid_b,),
            in_specs=[
                pl.BlockSpec((bt, C, HWp), lambda b: (b, 0, 0)),
                pl.BlockSpec((Cr, C), lambda b: (0, 0)),
                pl.BlockSpec((Cr, C), lambda b: (0, 0)),
            ],
            out_specs=pl.BlockSpec((bt, C, HWp), lambda b: (b, 0, 0)),
        ),
        compiler_params=pltpu.CompilerParams(
            dimension_semantics=("parallel",),
            vmem_limit_bytes=32 * 1024 * 1024,   # > v5e's 16 MiB scoped default,
                                                 # well under v7x's 64 MiB VMEM
        ),
    )(x3, w1, w2t)

    if HWp != HW:
        out = out[:, :, :HW]
    return out.reshape(B, C, H, W)


def se_layer_ref(x, w1, w2):
    """Pure-JAX reference matching the PyTorch SELayer forward."""
    y = jnp.mean(x, axis=(2, 3))                     # (B, C)
    y = y @ w1.T                                     # (B, C//r)
    y = jnp.where(y >= 0, y, 0.01 * y)               # LeakyReLU(0.01)
    y = jax.nn.sigmoid(y @ w2.T)                     # (B, C)
    return x * y[:, :, None, None]


if __name__ == "__main__":
    # Small shapes consistent with SELayer(channel=64, reduction=16)
    B, C, H, W = 2, 64, 8, 8
    reduction = 16
    Cr = C // reduction

    key = jax.random.PRNGKey(0)
    kx, k1, k2 = jax.random.split(key, 3)

    x = jax.random.normal(kx, (B, C, H, W), dtype=jnp.float32)
    # nn.Linear(C, C//r, bias=False) / nn.Linear(C//r, C, bias=False) weights
    bound1 = 1.0 / jnp.sqrt(C)
    bound2 = 1.0 / jnp.sqrt(Cr)
    w1 = jax.random.uniform(k1, (Cr, C), jnp.float32, -bound1, bound1)   # fc1.weight
    w2 = jax.random.uniform(k2, (C, Cr), jnp.float32, -bound2, bound2)   # fc2.weight

    out = se_layer(x, w1, w2)
    out = jax.block_until_ready(out)

    ref = se_layer_ref(x, w1, w2)
    assert out.shape == (B, C, H, W)
    assert jnp.allclose(out, ref, atol=1e-5, rtol=1e-5), "mismatch vs reference"

    print("KERNEL_OK")
</pallas_src>

<mosaic_0001>
module attributes {stable_mosaic.version = 11 : i64} {
  func.func @_se_kernel(%arg0: i32, %arg1: memref<2x64x128xf32, #tpu.memory_space<vmem>>, %arg2: memref<4x64xf32, #tpu.memory_space<vmem>>, %arg3: memref<4x64xf32, #tpu.memory_space<vmem>>, %arg4: memref<2x64x128xf32, #tpu.memory_space<vmem>>) attributes {dimension_semantics = [#tpu.dimension_semantics<parallel>], iteration_bounds = array<i64: 1>, scalar_prefetch = 0 : i64, scratch_operands = 0 : i64, tpu.core_type = #tpu.core_type<tc>, window_params = [{transform_indices = @transform_0, window_bounds = array<i64: 2, 64, 128>}, {pipeline_mode = #tpu.pipeline_mode<synchronous>, transform_indices = @transform_1, window_bounds = array<i64: 4, 64>}, {pipeline_mode = #tpu.pipeline_mode<synchronous>, transform_indices = @transform_2, window_bounds = array<i64: 4, 64>}, {transform_indices = @transform_3, window_bounds = array<i64: 2, 64, 128>}]} {
    %c0 = arith.constant 0 : index
    %c0_0 = arith.constant 0 : index
    %c0_1 = arith.constant 0 : index
    %0 = vector.load %arg1[%c0, %c0_0, %c0_1] : memref<2x64x128xf32, #tpu.memory_space<vmem>>, vector<2x64x128xf32>
    %cst = arith.constant dense<0.000000e+00> : vector<2x64xf32>
    %1 = vector.multi_reduction <add>, %0, %cst [2] : vector<2x64x128xf32> to vector<2x64xf32>
    %cst_2 = arith.constant 1.562500e-02 : f32
    %2 = vector.broadcast %cst_2 : f32 to vector<2x64xf32>
    %3 = arith.mulf %1, %2 : vector<2x64xf32>
    %c0_3 = arith.constant 0 : index
    %c0_4 = arith.constant 0 : index
    %4 = vector.load %arg2[%c0_3, %c0_4] : memref<4x64xf32, #tpu.memory_space<vmem>>, vector<4x64xf32>
    %cst_5 = arith.constant dense<0.000000e+00> : vector<2x4xf32>
    %5 = tpu.matmul %3, %4, %cst_5 {dimension_numbers = #tpu.dot_dimension_numbers<[1], [1], [0], [0], [0, 0, 1, 0], [], []>} : vector<2x64xf32>, vector<4x64xf32>, vector<2x4xf32> -> vector<2x4xf32>
    %cst_6 = arith.constant 0.000000e+00 : f32
    %6 = vector.broadcast %cst_6 : f32 to vector<2x4xf32>
    %7 = arith.cmpf oge, %5, %6 : vector<2x4xf32>
    %cst_7 = arith.constant 0.00999999977 : f32
    %8 = vector.broadcast %cst_7 : f32 to vector<2x4xf32>
    %9 = arith.mulf %8, %5 : vector<2x4xf32>
    %10 = arith.select %7, %5, %9 : vector<2x4xi1>, vector<2x4xf32>
    %c0_8 = arith.constant 0 : index
    %c0_9 = arith.constant 0 : index
    %11 = vector.load %arg3[%c0_8, %c0_9] : memref<4x64xf32, #tpu.memory_space<vmem>>, vector<4x64xf32>
    %cst_10 = arith.constant dense<0.000000e+00> : vector<2x64xf32>
    %12 = tpu.matmul %10, %11, %cst_10 {dimension_numbers = #tpu.dot_dimension_numbers<[1], [0], [0], [1], [0, 0, 1, 1], [], []>} : vector<2x4xf32>, vector<4x64xf32>, vector<2x64xf32> -> vector<2x64xf32>
    %13 = arith.negf %12 : vector<2x64xf32>
    %14 = math.exp %13 : vector<2x64xf32>
    %cst_11 = arith.constant 1.000000e+00 : f32
    %15 = vector.broadcast %cst_11 : f32 to vector<2x64xf32>
    %16 = arith.addf %15, %14 : vector<2x64xf32>
    %17 = arith.divf %15, %16 : vector<2x64xf32>
    %18 = vector.shape_cast %17 : vector<2x64xf32> to vector<2x64x1xf32>
    %19 = vector.broadcast %18 : vector<2x64x1xf32> to vector<2x64x128xf32>
    %20 = arith.mulf %0, %19 : vector<2x64x128xf32>
    %c0_12 = arith.constant 0 : index
    %c0_13 = arith.constant 0 : index
    %c0_14 = arith.constant 0 : index
    %21 = vector.load %arg4[%c0_12, %c0_13, %c0_14] : memref<2x64x128xf32, #tpu.memory_space<vmem>>, vector<2x64x128xf32>
    tpu.vector_store %arg4[%c0_12, %c0_13, %c0_14], %20 {strides = array<i32>} : memref<2x64x128xf32, #tpu.memory_space<vmem>>, vector<2x64x128xf32>,
    return
  }
  func.func @transform_0(%arg0: i32) -> (i32, i32, i32) {
    %c0_i32 = arith.constant 0 : i32
    %c0_i32_0 = arith.constant 0 : i32
    %c0_i32_1 = arith.constant 0 : i32
    return %arg0, %c0_i32, %c0_i32_0 : i32, i32, i32
  }
  func.func @transform_1(%arg0: i32) -> (i32, i32) {
    %c0_i32 = arith.constant 0 : i32
    %c0_i32_0 = arith.constant 0 : i32
    %c0_i32_1 = arith.constant 0 : i32
    return %c0_i32, %c0_i32_0 : i32, i32
  }
  func.func @transform_2(%arg0: i32) -> (i32, i32) {
    %c0_i32 = arith.constant 0 : i32
    %c0_i32_0 = arith.constant 0 : i32
    %c0_i32_1 = arith.constant 0 : i32
    return %c0_i32, %c0_i32_0 : i32, i32
  }
  func.func @transform_3(%arg0: i32) -> (i32, i32, i32) {
    %c0_i32 = arith.constant 0 : i32
    %c0_i32_0 = arith.constant 0 : i32
    %c0_i32_1 = arith.constant 0 : i32
    return %arg0, %c0_i32, %c0_i32_0 : i32, i32, i32
  }
}

</mosaic_0001>

<bundles_post_ra>
// kernel: tpu_custom_call.1
= control target key start
LH: loop header
LB: loop body
LE: loop exit
PB: predicated region body
PF: predicated region fallthrough
CT: control target
= control target key end

     0   :  { %8 = vsyncpa [#allocation3], 0  ;;  %s668_s0 = inlined_call_operand.hbm [shape: f32[2,64,128], index: 0, kind: input, shape index: {}]   ;;  %s669_s1 = inlined_call_operand.hbm [shape: f32[4,64], index: 1, kind: input, shape index: {}]   ;;  %s670_s2 = inlined_call_operand.hbm [shape: f32[4,64], index: 2, kind: input, shape index: {}]   ;;  %s671_s3 = inlined_call_operand.hbm [shape: f32[2,64,128], index: 3, kind: output, shape index: {}]  }
   0x1   :  { %9 = vsyncpa [#allocation6], 0  ;;  %s29_s14 = sshll.u32 %s669_s1, 4  ;;  %s30_s14 = int_to_ptr.hbm [resolvable:$true] %s29_s14 }
   0x2   :  { %10 = vsyncpa [#allocation4], 0  ;;  %s548_s15 = smov [#allocation5]   ;;  %s15_s19 = sshll.u32 %s668_s0, 4  ;;  %s16_s19 = int_to_ptr.hbm [resolvable:$true] %s15_s19 }
   0x3   :  { %s31_s16 = sshll.u32 %s548_s15, 4  ;;  %s549_s20 = smov [#allocation2]   ;;  %s32_s16 = int_to_ptr.vmem [resolvable:$true] %s31_s16 }
   0x4   :  { %34 = dma.hbm_to_vmem [thread:$0]  %s30_s14, 64, %s32_s16, [#allocation6]  }
   0x5   :  { %s17_s21 = sshll.u32 %s549_s20, 4  ;;  %s550_s22 = smov 128   ;;  %s18_s21 = int_to_ptr.vmem [resolvable:$true] %s17_s21 }
   0x6   :  { %s551_s23 = smov 8   ;;  %s40_s25 = sshll.u32 %s670_s2, 4  ;;  %s41_s25 = int_to_ptr.hbm [resolvable:$true] %s40_s25 }
   0x7   :  { %23 = dma.hbm_to_vmem [thread:$0]  %s16_s19, 2048, %s18_s21, [#allocation3], %s550_s22, %s550_s22, %s551_s23  }
   0x8   :  { %s552_s26 = smov [#allocation7]  }
   0x9   :  { %s42_s27 = sshll.u32 %s552_s26, 4  ;;  %s43_s27 = int_to_ptr.vmem [resolvable:$true] %s42_s27 }
   0xa   :  { %45 = dma.hbm_to_vmem [thread:$0]  %s41_s25, 64, %s43_s27, [#allocation6]  }
   0xb   :  { %542 = dma.done.wait [#allocation3], 2048  }
   0xc   :  { %543 = vsyncadd [#allocation3], 4294965248 }
   0xd   :  { %544 = dma.done.wait [#allocation6], 128  }
   0xe   :  { %545 = vsyncadd [#allocation6], 4294967168  ;;  %v586_v0 = vld [vmem:[#allocation2 + $0x40] sm:$0xff]  ;;  %v590_v2 = vld [vmem:[#allocation2 + $0x10] sm:$0xff]  ;;  %vm187_vm0 = vcmask 523264   ;;  %v139_v26 = vlaneseq  ;;  %vm144_vm1 = vcmask 130112  }
   0xf   :  { %v588_v1 = vld [vmem:[#allocation2] sm:$0xff]  ;;  %90 = vadd.xlane.f32.xlu1 %v586_v0  ;;  %78 = vadd.xlane.f32.xlu2 %v590_v2  ;;  %v595_v3 = vld [vmem:[#allocation2 + $0x48] sm:$0xff]  ;;  %v599_v5 = vld [vmem:[#allocation2 + $0x50] sm:$0xff]  ;;  %vm148_vm2 = vcmask 195712   ;;  %vm152_vm3 = vcmask 261312   ;;  %vm156_vm4 = vcmask 326912  }
  0x10   :  { %74 = vadd.xlane.f32.xlu0 %v588_v1  ;;  %v597_v4 = vld [vmem:[#allocation2 + $0x8] sm:$0xff]  ;;  %v604_v6 = vld [vmem:[#allocation2 + $0x58] sm:$0xff]  ;;  %v608_v8 = vld [vmem:[#allocation2 + $0x20] sm:$0xff]  ;;  %v140_v27 = vand.u32 127, %v139_v26  ;;  %vm160_vm5 = vcmask 392512   ;;  %vm164_vm6 = vcmask 458112  }
  0x11   :  { %v606_v7 = vld [vmem:[#allocation2 + $0x18] sm:$0xff]  ;;  %v613_v9 = vld [vmem:[#allocation2 + $0x28] sm:$0xff]  ;;  %v615_v10 = vld [vmem:[#allocation2 + $0x60] sm:$0xff]  ;;  %vm168_vm7 = vcmask 523712   ;;  %vm185_vm8 = vcmask 1041409   ;;  %vm221_vm9 = vcmask 1043456  }
  0x12   :  { %v617_v11 = vld [vmem:[#allocation2 + $0x68] sm:$0xff]  ;;  %v622_v12 = vld [vmem:[#allocation2 + $0x70] sm:$0xff]  ;;  %v626_v14 = vld [vmem:[#allocation2 + $0x38] sm:$0xff]  ;;  %v142_v30 = vadd.s32 4294967288, %v140_v27  ;;  %v146_v36 = vadd.s32 4294967280, %v140_v27  ;;  %v150_v39 = vadd.s32 4294967272, %v140_v27 }
  0x13   :  { %v624_v13 = vld [vmem:[#allocation2 + $0x30] sm:$0xff]  ;;  %v631_v15 = vld [vmem:[#allocation2 + $0x78] sm:$0xff]  ;;  %v122_v22 = vld [vmem:[#allocation5] sm:$0xf]  ;;  %v154_v47 = vadd.s32 4294967264, %v140_v27  ;;  %v158_v53 = vadd.s32 4294967256, %v140_v27 }
  0x14   :  { %414 = vmatpush.xpose.msk.msra.mxu0 %vm187_vm0, %v122_v22  ;;  %v162_v57 = vadd.s32 4294967248, %v140_v27  ;;  %vm217_vm11 = vcmask 31744   ;;  %s553_s0 = smov [#allocation8]   ;;  %s400_s30 = sshll.u32 %s671_s3, 4  ;;  %s401_s30 = int_to_ptr.hbm [resolvable:$true] %s400_s30 }
  0x15   :  { %s398_s2 = sshll.u32 %s553_s0, 4  ;;  %s399_s2 = int_to_ptr.vmem [resolvable:$true] %s398_s2 }
  0x17   :  { %92 = vadd.xlane.f32.xlu1 %v595_v3  ;;  %94 = vadd.xlane.f32.xlu2 %v599_v5 }
  0x18   :  { %76 = vadd.xlane.f32.xlu0 %v597_v4 }
  0x1f   :  { %96 = vadd.xlane.f32.xlu1 %v604_v6  ;;  %82 = vadd.xlane.f32.xlu2 %v608_v8 }
  0x20   :  { %80 = vadd.xlane.f32.xlu0 %v606_v7 }
  0x27   :  { %84 = vadd.xlane.f32.xlu1 %v613_v9  ;;  %100 = vadd.xlane.f32.xlu2 %v617_v11 }
  0x28   :  { %98 = vadd.xlane.f32.xlu0 %v615_v10 }
  0x2f   :  { %102 = vadd.xlane.f32.xlu1 %v622_v12  ;;  %88 = vadd.xlane.f32.xlu2 %v626_v14 }
  0x30   :  { %86 = vadd.xlane.f32.xlu0 %v624_v13 }
  0x38   :  { %104 = vadd.xlane.f32.xlu0 %v631_v15 }
  0x82   :  { %v91_v16 = vpop.xlane.xlu1 %90  ;;  %v79_v18 = vpop.xlane.xlu2 %78 }
  0x83   :  { %v75_v17 = vpop.xlane.xlu0 %74  ;;  %v114_v33 = vmul.f32 0.015625, %v91_v16  ;;  %v108_v37 = vmul.f32 0.015625, %v79_v18 }
  0x84   :  { %v106_v34 = vmul.f32 0.015625, %v75_v17 }
  0x85   :  { %v170_v42 = vperm.slane %v114_v33, %v140_v27  ;;  %v147_v46 = vperm.slane %v108_v37, %v146_v36 }
  0x86   :  { %v141_v43 = vperm.slane %v106_v34, %v140_v27 }
  0x8a   :  { %v93_v19 = vpop.xlane.xlu1 %92  ;;  %v95_v21 = vpop.xlane.xlu2 %94 }
  0x8b   :  { %v77_v20 = vpop.xlane.xlu0 %76  ;;  %v115_v35 = vmul.f32 0.015625, %v93_v19  ;;  %v116_v41 = vmul.f32 0.015625, %v95_v21  ;;  %v166_v21 = vadd.s32 4294967240, %v140_v27 }
  0x8c   :  { %v107_v31 = vmul.f32 0.015625, %v77_v20 }
  0x8d   :  { %v171_v44 = vperm.slane %v115_v35, %v142_v30  ;;  %v173_v56 = vperm.slane %v116_v41, %v146_v36 }
  0x8e   :  { %v143_v38 = vperm.slane %v107_v31, %v142_v30 }
  0x8f   :  { %v172_v60 = vsel %vm144_vm1, %v171_v44, %v170_v42  ;;  %v216_v42 = vld [vmem:[#allocation7] sm:$0xf] }
  0x90   :  { %v145_v51 = vsel %vm144_vm1, %v143_v38, %v141_v43  ;;  %416 = vmatpush.msk.msra.mxu1 %vm221_vm9, %v216_v42 }
  0x91   :  { %v149_v63 = vsel %vm148_vm2, %v147_v46, %v145_v51  ;;  %v266_v46 = vshrl.u32 %v139_v26, 7 }
  0x92   :  { %v97_v23 = vpop.xlane.xlu1 %96  ;;  %v83_v25 = vpop.xlane.xlu2 %82 }
  0x93   :  { %v81_v24 = vpop.xlane.xlu0 %80  ;;  %v117_v45 = vmul.f32 0.015625, %v97_v23  ;;  %v110_v48 = vmul.f32 0.015625, %v83_v25  ;;  %v174_v23 = vsel %vm148_vm2, %v173_v56, %v172_v60  ;;  %425 = vset.pattern.permute.xlu1 %v266_v46 }
  0x94   :  { %v109_v40 = vmul.f32 0.015625, %v81_v24 }
  0x95   :  { %v175_v61 = vperm.slane %v117_v45, %v150_v39  ;;  %v155_v16 = vperm.slane %v110_v48, %v154_v47  ;;  %v273_v48 = vadd.s32 8, %v266_v46 }
  0x96   :  { %v151_v52 = vperm.slane %v109_v40, %v150_v39 }
  0x97   :  { %v176_v25 = vsel %vm152_vm3, %v175_v61, %v174_v23  ;;  %426 = vset.pattern.permute.xlu2 %v273_v48 }
  0x98   :  { %v153_v19 = vsel %vm152_vm3, %v151_v52, %v149_v63  ;;  %v285_v63 = vadd.s32 24, %v266_v46 }
  0x9a   :  { %v85_v28 = vpop.xlane.xlu1 %84  ;;  %v101_v32 = vpop.xlane.xlu2 %100 }
  0x9b   :  { %v99_v29 = vpop.xlane.xlu0 %98  ;;  %v111_v54 = vmul.f32 0.015625, %v85_v28  ;;  %v119_v62 = vmul.f32 0.015625, %v101_v32 }
  0x9c   :  { %v118_v49 = vmul.f32 0.015625, %v99_v29  ;;  %v157_v29 = vsel %vm156_vm4, %v155_v16, %v153_v19  ;;  %v291_v16 = vadd.s32 32, %v266_v46  ;;  %v297_v19 = vadd.s32 40, %v266_v46 }
  0x9d   :  { %v159_v20 = vperm.slane %v111_v54, %v158_v53  ;;  %v179_v28 = vperm.slane %v119_v62, %v158_v53 }
  0x9e   :  { %v177_v17 = vperm.slane %v118_v49, %v154_v47  ;;  %v279_v47 = vadd.s32 16, %v266_v46 }
  0x9f   :  { %v161_v33 = vsel %vm160_vm5, %v159_v20, %v157_v29  ;;  %v309_v20 = vadd.s32 56, %v266_v46 }
  0xa0   :  { %v178_v30 = vsel %vm156_vm4, %v177_v17, %v176_v25  ;;  %427 = vset.pattern.permute.xlu0 %v279_v47 }
  0xa1   :  { %v180_v27 = vsel %vm160_vm5, %v179_v28, %v178_v30 }
  0xa2   :  { %v103_v55 = vpop.xlane.xlu1 %102  ;;  %v89_v59 = vpop.xlane.xlu2 %88 }
  0xa3   :  { %v87_v50 = vpop.xlane.xlu0 %86  ;;  %v120_v18 = vmul.f32 0.015625, %v103_v55  ;;  %v113_v22 = vmul.f32 0.015625, %v89_v59 }
  0xa4   :  { %v112_v58 = vmul.f32 0.015625, %v87_v50 }
  0xa5   :  { %v181_v31 = vperm.slane %v120_v18, %v162_v57  ;;  %v167_v34 = vperm.slane %v113_v22, %v166_v21  ;;  %v303_v18 = vadd.s32 48, %v266_v46 }
  0xa6   :  { %v163_v24 = vperm.slane %v112_v58, %v162_v57 }
  0xa7   :  { %v182_v38 = vsel %vm164_vm6, %v181_v31, %v180_v27 }
  0xa8   :  { %v165_v36 = vsel %vm164_vm6, %v163_v24, %v161_v33 }
  0xa9   :  { %v169_v39 = vsel %vm168_vm7, %v167_v34, %v165_v36 }
  0xab   :  { %v105_v32 = vpop.xlane.xlu0 %104 }
  0xac   :  { %v121_v35 = vmul.f32 0.015625, %v105_v32 }
  0xae   :  { %v183_v37 = vperm.slane %v121_v35, %v166_v21 }
  0xb0   :  { %v184_v40 = vsel %vm168_vm7, %v183_v37, %v182_v38 }
  0xb1   :  { %v186_v41 = vsel %vm185_vm8, %v184_v40, %v169_v39 }
  0xb2   :  { %415 = vmatmul.msk.f32.vlgmr.msra.gmra.mxu0 %vm187_vm0, %v186_v41 }
 0x12f   :  { %v210_v43 = vpop.f32.mrf.mxu0 }
 0x130   :  { %vm213_vm10 = vcmp.ge.f32.partialorder %v210_v43, 0.0  ;;  %v214_v44 = vmul.f32 0.01, %v210_v43 }
 0x132   :  { %v215_v45 = vsel %vm213_vm10, %v210_v43, %v214_v44 }
 0x133   :  { %417 = vmatmul.msk.f32.vlgmr.msra.gmra.mxu1 %vm217_vm11, %v215_v45 }
 0x1b0   :  { %v242_v49 = vpop.f32.mrf.mxu1 }
 0x1b1   :  { %v418_v50 = vmul.f32 -1.442695, %v242_v49 }
 0x1b3   :  { %442 = vpow2.f32 %v418_v50 }
 0x1b9   :  { %v443_v51 = vpop.eup %442 }
 0x1ba   :  { %v248_v52 = vadd.f32 1.0, %v443_v51 }
 0x1bc   :  { %444 = vrcp.f32 %v248_v52  ;;  %v260_v56 = vand.u32 2147483648, %v248_v52  ;;  %v258_v58 = vand.u32 2147483647, %v248_v52  ;;  %vm254_vm13 = vweird.f32 %v248_v52 }
 0x1be   :  { %v261_v26 = vor.u32 1.1754944e-38, %v260_v56  ;;  %vm259_vm15 = vcmp.eq.f32.partialorder %v258_v58, 8.507059e+37 }
 0x1c2   :  { %v445_v53 = vpop.eup %444 }
 0x1c3   :  { %v250_v54 = vmul.f32 %v445_v53, %v248_v52  ;;  %vm255_vm12 = vweird.f32 %v445_v53 }
 0x1c4   :  { %vm256_vm14 = vmor %vm254_vm13, %vm255_vm12 }
 0x1c5   :  { %v251_v55 = vsub.f32 1.0, %v250_v54 }
 0x1c7   :  { %v252_v57 = vmul.f32 %v445_v53, %v251_v55 }
 0x1c9   :  { %v253_v59 = vadd.f32 %v445_v53, %v252_v57 }
 0x1cb   :  { %v257_v60 = vsel %vm256_vm14, %v445_v53, %v253_v59 }
 0x1cc   :  { %v262_v61 = vsel %vm259_vm15, %v261_v26, %v257_v60 }
 0x1cd   :  { %v264_v62 = vperm.slane %v262_v61, 0  ;;  %v313_v17 = vperm.slane %v262_v61, 1 }
 0x1cf   :  { %281 = vperm.xlu0 %427, %v264_v62   ;;  %275 = vperm.xlu2 %426, %v264_v62  }
 0x1d0   :  { %269 = vperm.xlu1 %425, %v264_v62  }
 0x1d7   :  { %434 = vset.pattern.permute.xlu0 %v273_v48  ;;  %428 = vset.pattern.permute.xlu2 %v285_v63 }
 0x1d8   :  { %429 = vset.pattern.permute.xlu1 %v291_v16 }
 0x1df   :  { %324 = vperm.xlu0 %434, %v313_v17   ;;  %287 = vperm.xlu2 %428, %v264_v62  }
 0x1e0   :  { %293 = vperm.xlu1 %429, %v264_v62  }
 0x1e7   :  { %439 = vset.pattern.permute.xlu0 %v303_v18  ;;  %430 = vset.pattern.permute.xlu2 %v297_v19 }
 0x1e8   :  { %431 = vset.pattern.permute.xlu1 %v303_v18 }
 0x1ef   :  { %354 = vperm.xlu0 %439, %v313_v17   ;;  %299 = vperm.xlu2 %430, %v264_v62  }
 0x1f0   :  { %305 = vperm.xlu1 %431, %v264_v62  }
 0x1f7   :  { %432 = vset.pattern.permute.xlu2 %v309_v20  ;;  %441 = vset.pattern.permute.xlu0 %v309_v20 }
 0x1f8   :  { %433 = vset.pattern.permute.xlu1 %v266_v46 }
 0x1ff   :  { %311 = vperm.xlu2 %432, %v264_v62  }
 0x200   :  { %318 = vperm.xlu1 %433, %v313_v17  }
 0x207   :  { %435 = vset.pattern.permute.xlu2 %v279_v47 }
 0x208   :  { %436 = vset.pattern.permute.xlu1 %v285_v63 }
 0x20f   :  { %330 = vperm.xlu2 %435, %v313_v17  }
 0x210   :  { %336 = vperm.xlu1 %436, %v313_v17  }
 0x217   :  { %437 = vset.pattern.permute.xlu2 %v291_v16 }
 0x218   :  { %438 = vset.pattern.permute.xlu1 %v297_v19 }
 0x21f   :  { %342 = vperm.xlu2 %437, %v313_v17  }
 0x220   :  { %348 = vperm.xlu1 %438, %v313_v17  }
 0x227   :  { %440 = vset.pattern.permute.xlu2 %v309_v20 }
 0x229   :  { %v276_v21 = vpop.permute.xlu2 %275 }
 0x22a   :  { %v363_v22 = vmul.f32 %v276_v21, %v597_v4 }
 0x22c   :  { %379 = vst [vmem:[#allocation8 + $0x8] sm:$0xff] %v363_v22 }
 0x22f   :  { %360 = vperm.xlu2 %440, %v313_v17  }
 0x239   :  { %v288_v23 = vpop.permute.xlu2 %287 }
 0x23a   :  { %v365_v24 = vmul.f32 %v288_v23, %v606_v7 }
 0x23c   :  { %381 = vst [vmem:[#allocation8 + $0x18] sm:$0xff] %v365_v24 }
 0x241   :  { %v282_v25 = vpop.permute.xlu0 %281 }
 0x242   :  { %v364_v28 = vmul.f32 %v282_v25, %v590_v2  ;;  %v270_v29 = vpop.permute.xlu1 %269 }
 0x243   :  { %v362_v30 = vmul.f32 %v270_v29, %v588_v1 }
 0x244   :  { %380 = vst [vmem:[#allocation8 + $0x10] sm:$0xff] %v364_v28 }
 0x245   :  { %378 = vst [vmem:[#allocation8] sm:$0xff] %v362_v30 }
 0x249   :  { %v300_v31 = vpop.permute.xlu2 %299 }
 0x24a   :  { %v367_v32 = vmul.f32 %v300_v31, %v613_v9 }
 0x24c   :  { %383 = vst [vmem:[#allocation8 + $0x28] sm:$0xff] %v367_v32 }
 0x251   :  { %v325_v33 = vpop.permute.xlu0 %324 }
 0x252   :  { %v371_v4 = vmul.f32 %v325_v33, %v595_v3  ;;  %v294_v34 = vpop.permute.xlu1 %293 }
 0x253   :  { %v366_v35 = vmul.f32 %v294_v34, %v608_v8 }
 0x254   :  { %387 = vst [vmem:[#allocation8 + $0x48] sm:$0xff] %v371_v4 }
 0x255   :  { %382 = vst [vmem:[#allocation8 + $0x20] sm:$0xff] %v366_v35 }
 0x259   :  { %v312_v7 = vpop.permute.xlu2 %311 }
 0x25a   :  { %v369_v2 = vmul.f32 %v312_v7, %v626_v14 }
 0x25c   :  { %385 = vst [vmem:[#allocation8 + $0x38] sm:$0xff] %v369_v2 }
 0x261   :  { %v355_v36 = vpop.permute.xlu0 %354 }
 0x262   :  { %v376_v1 = vmul.f32 %v355_v36, %v622_v12  ;;  %v306_v27 = vpop.permute.xlu1 %305 }
 0x263   :  { %v368_v37 = vmul.f32 %v306_v27, %v624_v13 }
 0x264   :  { %392 = vst [vmem:[#allocation8 + $0x70] sm:$0xff] %v376_v1 }
 0x265   :  { %384 = vst [vmem:[#allocation8 + $0x30] sm:$0xff] %v368_v37 }
 0x269   :  { %v331_v9 = vpop.permute.xlu2 %330 }
 0x26a   :  { %v372_v3 = vmul.f32 %v331_v9, %v599_v5 }
 0x26c   :  { %388 = vst [vmem:[#allocation8 + $0x50] sm:$0xff] %v372_v3 }
 0x272   :  { %v319_v38 = vpop.permute.xlu1 %318 }
 0x273   :  { %v370_v8 = vmul.f32 %v319_v38, %v586_v0 }
 0x275   :  { %386 = vst [vmem:[#allocation8 + $0x40] sm:$0xff] %v370_v8 }
 0x279   :  { %v343_v39 = vpop.permute.xlu2 %342 }
 0x27a   :  { %v374_v14 = vmul.f32 %v343_v39, %v615_v10 }
 0x27c   :  { %390 = vst [vmem:[#allocation8 + $0x60] sm:$0xff] %v374_v14 }
 0x282   :  { %v337_v40 = vpop.permute.xlu1 %336 }
 0x283   :  { %v373_v12 = vmul.f32 %v337_v40, %v604_v6 }
 0x285   :  { %389 = vst [vmem:[#allocation8 + $0x58] sm:$0xff] %v373_v12 }
 0x289   :  { %v361_v41 = vpop.permute.xlu2 %360 }
 0x28a   :  { %v377_v13 = vmul.f32 %v361_v41, %v631_v15 }
 0x28c   :  { %393 = vst [vmem:[#allocation8 + $0x78] sm:$0xff] %v377_v13 }
 0x292   :  { %v349_v0 = vpop.permute.xlu1 %348 }
 0x293   :  { %v375_v5 = vmul.f32 %v349_v0, %v617_v11 }
 0x295   :  { %391 = vst [vmem:[#allocation8 + $0x68] sm:$0xff] %v375_v5 }
 0x296   :  { %406 = dma.vmem_to_hbm [thread:$0]  %s399_s2, 2048, %s401_s30, [#allocation4], %s550_s22, %s550_s22, %s551_s23  }
 0x297   :  { %546 = dma.done.wait [#allocation4], 2048  }
 0x298   :  { %547 = vsyncadd [#allocation4], 4294965248 }
 0x299   :  { %411 = vsyncpa [#allocation3], 1 }
 0x29a   :  { %412 = vsyncpa [#allocation6], 1 }
 0x29b   :  { %413 = vsyncpa [#allocation4], 1 }

</bundles_post_ra>
